<compile_context>
chip_gen: v5e
topology: v5e:2x2
jax: 0.10.0
libtpu: 0.0.40
codegen_flags: <defaults>
</compile_context>

<pallas_src>
import functools

import jax
import jax.numpy as jnp
from jax import lax
from jax.experimental import pallas as pl
from jax.experimental.pallas import tpu as pltpu


def _action_loss_kernel(t_ref, p_ref, lab_ref, out_ref, *, alpha, n_rows, tile_n):
    pid = pl.program_id(0)

    t = t_ref[...].astype(jnp.float32)      # (TILE_N, C) action logits
    p = p_ref[...].astype(jnp.float32)      # (TILE_N, C) privacy logits
    lab = lab_ref[...]                      # (TILE_N, 1) int32 class indices
    tn, C = t.shape

    # Valid-row mask for the (possibly partial) last tile.
    row = lax.broadcasted_iota(jnp.int32, (tn, 1), 0) + pid * tile_n
    valid = row < n_rows                                          # (TILE_N, 1)

    # ---- Per-row cross entropy:  logsumexp(t) - t[label] ----
    m_t = jnp.max(t, axis=1, keepdims=True)                       # (TILE_N, 1)
    lse = m_t + jnp.log(jnp.sum(jnp.exp(t - m_t), axis=1, keepdims=True))
    iota = lax.broadcasted_iota(jnp.int32, (tn, C), 1)
    picked = jnp.sum(jnp.where(iota == lab, t, 0.0), axis=1, keepdims=True)
    ce_row = lse - picked                                         # (TILE_N, 1)

    # ---- Per-row entropy of softmax(p):  log Z - (1/Z) * sum(e * s) ----
    m_p = jnp.max(p, axis=1, keepdims=True)
    s = p - m_p
    e = jnp.exp(s)
    z = jnp.sum(e, axis=1, keepdims=True)                         # (TILE_N, 1)
    # Exact reciprocal: it is per-row (not per-element), so its cost is
    # negligible and it keeps the result within tight tolerance of the ref.
    inv_z = pl.reciprocal(z)
    ent_row = jnp.log(z) - inv_z * jnp.sum(e * s, axis=1, keepdims=True)

    part = jnp.where(valid, ce_row - jnp.float32(alpha) * ent_row, 0.0)
    out_ref[...] = jnp.full((1, 1), jnp.sum(part), dtype=jnp.float32)


def _choose_tile_n(N, C, itemsize):
    # Keep each input block around <= 2 MiB so (2 inputs x 2 pipeline buffers)
    # stays well under the scoped-VMEM default on every generation
    # (v5e 16 MiB default / 128 MiB, v6e 32/128, v7x 32/64).
    target_block_bytes = 2 * 1024 * 1024
    tile = target_block_bytes // max(1, C * itemsize)
    tile = max(8, min(int(tile), N))
    if tile < N:
        tile = max(8, (tile // 8) * 8)   # sublane-aligned partial tiles
    return int(tile)


def action_loss(T_pred, P_pred, L_action, alpha=1.0):
    N, C = T_pred.shape
    lab = L_action.reshape(N, 1).astype(jnp.int32)

    itemsize = jnp.dtype(T_pred.dtype).itemsize
    tile_n = _choose_tile_n(N, C, itemsize)
    num_tiles = pl.cdiv(N, tile_n)

    kernel = functools.partial(
        _action_loss_kernel, alpha=float(alpha), n_rows=N, tile_n=tile_n)

    cost = pl.CostEstimate(
        flops=10 * N * C,
        transcendentals=2 * N * C + 2 * N,     # exp(t), exp(p) per elem; log per row
        bytes_accessed=2 * N * C * itemsize + N * 4 + num_tiles * 4,
    )

    partials = pl.pallas_call(
        kernel,
        out_shape=jax.ShapeDtypeStruct((num_tiles, 1), jnp.float32),
        grid=(num_tiles,),
        in_specs=[
            pl.BlockSpec((tile_n, C), lambda i: (i, 0)),
            pl.BlockSpec((tile_n, C), lambda i: (i, 0)),
            pl.BlockSpec((tile_n, 1), lambda i: (i, 0)),
        ],
        out_specs=pl.BlockSpec((1, 1), lambda i: (i, 0)),
        compiler_params=pltpu.CompilerParams(
            dimension_semantics=("parallel",),
            vmem_limit_bytes=32 * 1024 * 1024,
        ),
        cost_estimate=cost,
    )(T_pred, P_pred, lab)

    # Tiny final reduction over per-tile partials (num_tiles elements).
    return jnp.sum(partials) / jnp.float32(N)


def _action_loss_ref(T_pred, P_pred, L_action, alpha=1.0, eps=1e-6):
    # Pure-JAX reference matching the PyTorch module.
    logp = jax.nn.log_softmax(T_pred.astype(jnp.float32), axis=1)
    ce = -jnp.mean(jnp.take_along_axis(logp, L_action[:, None], axis=1))
    sm = jnp.clip(jax.nn.softmax(P_pred.astype(jnp.float32), axis=1), eps, 1.0)
    ent = -jnp.mean(jnp.sum(sm * jnp.log(sm), axis=1))
    return ce - alpha * ent


if __name__ == "__main__":
    key = jax.random.PRNGKey(0)
    k1, k2, k3 = jax.random.split(key, 3)

    N, C = 8, 16  # batch, num classes
    T_pred = jax.random.normal(k1, (N, C), dtype=jnp.float32)
    P_pred = jax.random.normal(k2, (N, C), dtype=jnp.float32)
    L_action = jax.random.randint(k3, (N,), 0, C, dtype=jnp.int32)

    loss = action_loss(T_pred, P_pred, L_action, alpha=1.0)
    jax.block_until_ready(loss)

    ref = _action_loss_ref(T_pred, P_pred, L_action, alpha=1.0)
    assert jnp.allclose(loss, ref, atol=1e-5, rtol=1e-5), (loss, ref)

    print("KERNEL_OK")
</pallas_src>

<mosaic_0001>
module attributes {stable_mosaic.version = 11 : i64} {
  func.func @_action_loss_kernel(%arg0: i32, %arg1: memref<8x16xf32, #tpu.memory_space<vmem>>, %arg2: memref<8x16xf32, #tpu.memory_space<vmem>>, %arg3: memref<8x1xi32, #tpu.memory_space<vmem>>, %arg4: memref<1x1xf32, #tpu.memory_space<vmem>>) attributes {dimension_semantics = [#tpu.dimension_semantics<parallel>], iteration_bounds = array<i64: 1>, scalar_prefetch = 0 : i64, scratch_operands = 0 : i64, tpu.core_type = #tpu.core_type<tc>, window_params = [{transform_indices = @transform_0, window_bounds = array<i64: 8, 16>}, {transform_indices = @transform_1, window_bounds = array<i64: 8, 16>}, {transform_indices = @transform_2, window_bounds = array<i64: 8, 1>}, {transform_indices = @transform_3, window_bounds = array<i64: 1, 1>}]} {
    %c0 = arith.constant 0 : index
    %c0_0 = arith.constant 0 : index
    %0 = vector.load %arg1[%c0, %c0_0] : memref<8x16xf32, #tpu.memory_space<vmem>>, vector<8x16xf32>
    %c0_1 = arith.constant 0 : index
    %c0_2 = arith.constant 0 : index
    %1 = vector.load %arg2[%c0_1, %c0_2] : memref<8x16xf32, #tpu.memory_space<vmem>>, vector<8x16xf32>
    %c0_3 = arith.constant 0 : index
    %c0_4 = arith.constant 0 : index
    %2 = vector.load %arg3[%c0_3, %c0_4] : memref<8x1xi32, #tpu.memory_space<vmem>>, vector<8x1xi32>
    %3 = tpu.iota {dimensions = array<i32: 0>} : vector<8x1xi32>
    %c8_i32 = arith.constant 8 : i32
    %4 = arith.muli %arg0, %c8_i32 : i32
    %5 = vector.broadcast %4 : i32 to vector<8x1xi32>
    %6 = arith.addi %3, %5 : vector<8x1xi32>
    %c8_i32_5 = arith.constant 8 : i32
    %7 = vector.broadcast %c8_i32_5 : i32 to vector<8x1xi32>
    %8 = arith.cmpi slt, %6, %7 : vector<8x1xi32>
    %cst = arith.constant dense<0xFF800000> : vector<8xf32>
    %9 = vector.multi_reduction <maximumf>, %0, %cst [1] : vector<8x16xf32> to vector<8xf32>
    %10 = vector.shape_cast %9 : vector<8xf32> to vector<8x1xf32>
    %11 = vector.broadcast %10 : vector<8x1xf32> to vector<8x16xf32>
    %12 = arith.subf %0, %11 : vector<8x16xf32>
    %13 = math.exp %12 : vector<8x16xf32>
    %cst_6 = arith.constant dense<0.000000e+00> : vector<8xf32>
    %14 = vector.multi_reduction <add>, %13, %cst_6 [1] : vector<8x16xf32> to vector<8xf32>
    %15 = vector.shape_cast %14 : vector<8xf32> to vector<8x1xf32>
    %16 = math.log %15 : vector<8x1xf32>
    %17 = arith.addf %10, %16 : vector<8x1xf32>
    %18 = tpu.iota {dimensions = array<i32: 1>} : vector<8x16xi32>
    %19 = vector.broadcast %2 : vector<8x1xi32> to vector<8x16xi32>
    %20 = arith.cmpi eq, %18, %19 : vector<8x16xi32>
    %cst_7 = arith.constant 0.000000e+00 : f32
    %21 = vector.broadcast %cst_7 : f32 to vector<8x16xf32>
    %22 = arith.select %20, %0, %21 : vector<8x16xi1>, vector<8x16xf32>
    %cst_8 = arith.constant dense<0.000000e+00> : vector<8xf32>
    %23 = vector.multi_reduction <add>, %22, %cst_8 [1] : vector<8x16xf32> to vector<8xf32>
    %24 = vector.shape_cast %23 : vector<8xf32> to vector<8x1xf32>
    %25 = arith.subf %17, %24 : vector<8x1xf32>
    %cst_9 = arith.constant dense<0xFF800000> : vector<8xf32>
    %26 = vector.multi_reduction <maximumf>, %1, %cst_9 [1] : vector<8x16xf32> to vector<8xf32>
    %27 = vector.shape_cast %26 : vector<8xf32> to vector<8x1xf32>
    %28 = vector.broadcast %27 : vector<8x1xf32> to vector<8x16xf32>
    %29 = arith.subf %1, %28 : vector<8x16xf32>
    %30 = math.exp %29 : vector<8x16xf32>
    %cst_10 = arith.constant dense<0.000000e+00> : vector<8xf32>
    %31 = vector.multi_reduction <add>, %30, %cst_10 [1] : vector<8x16xf32> to vector<8xf32>
    %32 = vector.shape_cast %31 : vector<8xf32> to vector<8x1xf32>
    %33 = tpu.reciprocal %32 : vector<8x1xf32> -> vector<8x1xf32>
    %34 = math.log %32 : vector<8x1xf32>
    %35 = arith.mulf %30, %29 : vector<8x16xf32>
    %cst_11 = arith.constant dense<0.000000e+00> : vector<8xf32>
    %36 = vector.multi_reduction <add>, %35, %cst_11 [1] : vector<8x16xf32> to vector<8xf32>
    %37 = vector.shape_cast %36 : vector<8xf32> to vector<8x1xf32>
    %38 = arith.mulf %33, %37 : vector<8x1xf32>
    %39 = arith.subf %34, %38 : vector<8x1xf32>
    %cst_12 = arith.constant 1.000000e+00 : f32
    %40 = vector.broadcast %cst_12 : f32 to vector<8x1xf32>
    %41 = arith.mulf %40, %39 : vector<8x1xf32>
    %42 = arith.subf %25, %41 : vector<8x1xf32>
    %cst_13 = arith.constant 0.000000e+00 : f32
    %43 = vector.broadcast %cst_13 : f32 to vector<8x1xf32>
    %44 = arith.select %8, %42, %43 : vector<8x1xi1>, vector<8x1xf32>
    %45 = vector.shape_cast %44 : vector<8x1xf32> to vector<1x8x1xf32>
    %cst_14 = arith.constant dense<0.000000e+00> : vector<1xf32>
    %46 = vector.multi_reduction <add>, %45, %cst_14 [1, 2] : vector<1x8x1xf32> to vector<1xf32>
    %47 = vector.shape_cast %46 : vector<1xf32> to vector<1x1x1xf32>
    %48 = vector.extract %47[0, 0, 0] : f32 from vector<1x1x1xf32>
    %49 = vector.broadcast %48 : f32 to vector<1x1xf32>
    %c0_15 = arith.constant 0 : index
    %c0_16 = arith.constant 0 : index
    %50 = vector.load %arg4[%c0_15, %c0_16] : memref<1x1xf32, #tpu.memory_space<vmem>>, vector<1x1xf32>
    tpu.vector_store %arg4[%c0_15, %c0_16], %49 {strides = array<i32>} : memref<1x1xf32, #tpu.memory_space<vmem>>, vector<1x1xf32>,
    return
  }
  func.func @transform_0(%arg0: i32) -> (i32, i32) {
    %c0_i32 = arith.constant 0 : i32
    %c0_i32_0 = arith.constant 0 : i32
    return %arg0, %c0_i32 : i32, i32
  }
  func.func @transform_1(%arg0: i32) -> (i32, i32) {
    %c0_i32 = arith.constant 0 : i32
    %c0_i32_0 = arith.constant 0 : i32
    return %arg0, %c0_i32 : i32, i32
  }
  func.func @transform_2(%arg0: i32) -> (i32, i32) {
    %c0_i32 = arith.constant 0 : i32
    %c0_i32_0 = arith.constant 0 : i32
    return %arg0, %c0_i32 : i32, i32
  }
  func.func @transform_3(%arg0: i32) -> (i32, i32) {
    %c0_i32 = arith.constant 0 : i32
    %c0_i32_0 = arith.constant 0 : i32
    return %arg0, %c0_i32 : i32, i32
  }
}

</mosaic_0001>

<bundles_post_ra>
// kernel: tpu_custom_call.1
= control target key start
LH: loop header
LB: loop body
LE: loop exit
PB: predicated region body
PF: predicated region fallthrough
CT: control target
= control target key end

     0   :  { %8 = vsyncpa [#allocation3], 0  ;;  %s236_s0 = inlined_call_operand.vmem [shape: f32[8,16], index: 0, kind: input, shape index: {}]   ;;  %s237_s1 = inlined_call_operand.hbm [shape: f32[8,16], index: 1, kind: input, shape index: {}]   ;;  %s238_s2 = inlined_call_operand.vmem [shape: s32[8,1], index: 2, kind: input, shape index: {}]   ;;  %s239_s3 = inlined_call_operand.hbm [shape: f32[1,1], index: 3, kind: output, shape index: {}]  }
   0x1   :  { %9 = vsyncpa [#allocation4], 0  ;;  %s17_s14 = sshll.u32 %s237_s1, 4  ;;  %s195_s15 = smov [#allocation2]   ;;  %s18_s14 = int_to_ptr.hbm [resolvable:$true] %s17_s14 }
   0x2   :  { %s19_s16 = sshll.u32 %s195_s15, 4  ;;  %s20_s16 = int_to_ptr.vmem [resolvable:$true] %s19_s16 }
   0x3   :  { %22 = dma.hbm_to_vmem [thread:$0]  %s18_s14, 128, %s20_s16, [#allocation3]  }
   0x4   :  { %191 = dma.done.wait [#allocation3], 128  }
   0x5   :  { %192 = vsyncadd [#allocation3], 4294967168  ;;  %v196_v0 = vmov 0   ;;  %vm38_vm0 = vcmask 130048   ;;  %v30_v1 = vld [vmem:[#allocation2] sm:$0xff]  ;;  %v51_v6 = vlaneseq  ;;  %vm95_vm6 = vcmask 7168  }
   0x6   :  { %131 = vset.pattern.permute.xlu1 %v196_v0  ;;  %132 = vset.pattern.permute.xlu0 %v196_v0  ;;  %v31_v2 = vld [vmem:[%s238_s2] sm:$0xff]  ;;  %v62_v3 = vsel %vm38_vm0, %v30_v1, -inf  ;;  %s116_s22 = sshll.u32 %s239_s3, 4  ;;  %vm107_vm7 = vcmask 0   ;;  %s117_s22 = int_to_ptr.hbm [resolvable:$true] %s116_s22 }
   0x7   :  { %54 = vperm.xlu1 %131, %v31_v2   ;;  %63 = vmax.xlane.f32.xlu0 %v62_v3  ;;  %v29_v4 = vld [vmem:[%s236_s0] sm:$0xff]  ;;  %v52_v7 = vand.u32 127, %v51_v6  ;;  %s197_s0 = smov [#allocation5]  }
   0x8   :  { %v39_v5 = vsel %vm38_vm0, %v29_v4, -inf  ;;  %s114_s2 = sshll.u32 %s197_s0, 4  ;;  %s115_s2 = int_to_ptr.vmem [resolvable:$true] %s114_s2 }
   0xf   :  { %40 = vmax.xlane.f32.xlu0 %v39_v5 }
  0x79   :  { %v55_v8 = vpop.permute.xlu1 %54 }
  0x7a   :  { %vm56_vm1 = vcmp.eq.s32.totalorder %v52_v7, %v55_v8  ;;  %v64_v9 = vpop.xlane.xlu0 %63 }
  0x7b   :  { %v57_v10 = vsel %vm56_vm1, %v29_v4, 0.0  ;;  %v65_v11 = vsub.f32 %v30_v1, %v64_v9 }
  0x7c   :  { %v58_v12 = vsel %vm38_vm0, %v57_v10, 0.0 }
  0x7d   :  { %59 = vadd.xlane.f32.xlu0 %v58_v12  ;;  %v66_v13 = vmul.f32 1.442695, %v65_v11 }
  0x7f   :  { %133 = vpow2.f32 %v66_v13 }
  0x82   :  { %v41_v14 = vpop.xlane.xlu0 %40 }
  0x83   :  { %v42_v15 = vsub.f32 %v29_v4, %v41_v14 }
  0x85   :  { %v134_v16 = vpop.eup %133  ;;  %v43_v17 = vmul.f32 1.442695, %v42_v15 }
  0x86   :  { %v68_v18 = vsel %vm38_vm0, %v134_v16, 0.0  ;;  %v87_v21 = vmul.f32 %v134_v16, %v65_v11 }
  0x87   :  { %135 = vpow2.f32 %v43_v17  ;;  %69 = vadd.xlane.f32.xlu1 %v68_v18 }
  0x88   :  { %v88_v22 = vsel %vm38_vm0, %v87_v21, 0.0 }
  0x8d   :  { %v136_v19 = vpop.eup %135 }
  0x8e   :  { %v45_v20 = vsel %vm38_vm0, %v136_v19, 0.0 }
  0x8f   :  { %46 = vadd.xlane.f32.xlu2 %v45_v20 }
  0x97   :  { %89 = vadd.xlane.f32.xlu2 %v88_v22 }
  0xf0   :  { %v60_v39 = vpop.xlane.xlu0 %59 }
  0xfa   :  { %v70_v23 = vpop.xlane.xlu1 %69 }
  0xfb   :  { %137 = vrcp.f32 %v70_v23  ;;  %v82_v28 = vand.u32 2147483648, %v70_v23  ;;  %v80_v30 = vand.u32 2147483647, %v70_v23  ;;  %vm76_vm3 = vweird.f32 %v70_v23 }
  0xfc   :  { %139 = vlog2.f32 %v70_v23 }
  0xfd   :  { %v83_v34 = vor.u32 1.1754944e-38, %v82_v28  ;;  %vm81_vm5 = vcmp.eq.f32.partialorder %v80_v30, 8.507059e+37 }
 0x101   :  { %v138_v24 = vpop.eup %137 }
 0x102   :  { %v72_v25 = vmul.f32 %v138_v24, %v70_v23  ;;  %v47_v26 = vpop.xlane.xlu2 %46  ;;  %vm77_vm2 = vweird.f32 %v138_v24  ;;  %v140_v31 = vpop.eup %139 }
 0x103   :  { %141 = vlog2.f32 %v47_v26  ;;  %vm78_vm4 = vmor %vm76_vm3, %vm77_vm2  ;;  %v86_v40 = vmul.f32 0.6931472, %v140_v31 }
 0x104   :  { %v73_v27 = vsub.f32 1.0, %v72_v25 }
 0x106   :  { %v74_v29 = vmul.f32 %v138_v24, %v73_v27 }
 0x108   :  { %v75_v32 = vadd.f32 %v138_v24, %v74_v29 }
 0x109   :  { %v142_v33 = vpop.eup %141 }
 0x10a   :  { %v49_v35 = vmul.f32 0.6931472, %v142_v33  ;;  %v79_v36 = vsel %vm78_vm4, %v138_v24, %v75_v32  ;;  %v90_v37 = vpop.xlane.xlu2 %89 }
 0x10b   :  { %v84_v38 = vsel %vm81_vm5, %v83_v34, %v79_v36 }
 0x10c   :  { %v91_v41 = vmul.f32 %v90_v37, %v84_v38  ;;  %v50_v42 = vadd.f32 %v49_v35, %v41_v14 }
 0x10e   :  { %v92_v43 = vsub.f32 %v86_v40, %v91_v41  ;;  %v61_v44 = vsub.f32 %v50_v42, %v60_v39 }
 0x110   :  { %v93_v45 = vsub.f32 %v61_v44, %v92_v43 }
 0x112   :  { %v96_v46 = vsel %vm95_vm6, %v93_v45, 0.0 }
 0x113   :  { %97 = vadd.xlane.f32.xlu2 %v96_v46 }
 0x186   :  { %v98_v47 = vpop.xlane.xlu2 %97 }
 0x187   :  { %v99_v48 = vrot.slane %v98_v47, 4 }
 0x189   :  { %v100_v49 = vadd.f32 %v99_v48, %v98_v47 }
 0x18b   :  { %v101_v50 = vrot.slane %v100_v49, 2 }
 0x18d   :  { %v102_v51 = vadd.f32 %v101_v50, %v100_v49 }
 0x18f   :  { %v103_v52 = vrot.slane %v102_v51, 1 }
 0x191   :  { %v104_v53 = vadd.f32 %v103_v52, %v102_v51 }
 0x193   :  { %126 = vpush %v104_v53 }
 0x1c4   :  { %s127_s23 = spop %126 }
 0x1c5   :  { %v106_v54 = vstv %s127_s23 }
 0x1c6   :  { %108 = vst.msk [vmem:[#allocation5] sm:$0x1] %vm107_vm7, %v106_v54 }
 0x1c7   :  { %119 = dma.vmem_to_hbm [thread:$0]  %s115_s2, 16, %s117_s22, [#allocation4]  }
 0x1c8   :  { %193 = dma.done.wait [#allocation4], 16  }
 0x1c9   :  { %194 = vsyncadd [#allocation4], 4294967280 }
 0x1ca   :  { %124 = vsyncpa [#allocation3], 1 }
 0x1cb   :  { %125 = vsyncpa [#allocation4], 1 }

</bundles_post_ra>
